<compile_context>
chip_gen: v5e
topology: v5e:2x2
jax: 0.10.0
libtpu: 0.0.40
codegen_flags: <defaults>
</compile_context>

<pallas_src>
import jax
import jax.numpy as jnp
from jax.experimental import pallas as pl
from jax.experimental.pallas import tpu as pltpu


def _round_up(x, m):
    return ((x + m - 1) // m) * m


def policy_kernel(x_ref, w1_ref, b1_ref, w2_ref, b2_ref, w3_ref, b3_ref, out_ref):
    """One batch tile: x (TB, S) -> probs (TB, A). Weights/biases resident in VMEM.

    Matmuls accumulate in f32 via preferred_element_type; bias add / ReLU / softmax
    stay in f32 so bf16 operands are safe on v6e/v7x and a non-issue on v5e (whose
    VPU/EUP have no bf16).
    """
    # fc1 + relu
    h1 = jnp.dot(x_ref[...], w1_ref[...], preferred_element_type=jnp.float32)
    h1 = jnp.maximum(h1 + b1_ref[...], 0.0)
    # fc2 + relu (cast back to the weight dtype so the MXU sees matching operands)
    h2 = jnp.dot(h1.astype(w2_ref.dtype), w2_ref[...], preferred_element_type=jnp.float32)
    h2 = jnp.maximum(h2 + b2_ref[...], 0.0)
    # fc3
    logits = jnp.dot(h2.astype(w3_ref.dtype), w3_ref[...], preferred_element_type=jnp.float32)
    logits = logits + b3_ref[...]
    # numerically stable softmax over the last (lane) axis
    m = jnp.max(logits, axis=-1, keepdims=True)
    e = jnp.exp(logits - m)
    denom = jnp.sum(e, axis=-1, keepdims=True)
    # EUP reciprocal instead of a full-width VPU divide; approx=True is even cheaper
    # if ~1e-3 relative error on the probabilities is acceptable.
    out_ref[...] = (e * pl.reciprocal(denom, approx=False)).astype(out_ref.dtype)


def policy_network_forward(state, params, *, block_b=512, use_bf16=False):
    """Pallas forward: state [B, state_dim] f32 -> probs [B, action_dim] f32."""
    w1, b1, w2, b2, w3, b3 = params
    B, state_dim = state.shape
    fc1_dim = w1.shape[1]
    fc2_dim = w2.shape[1]
    action_dim = w3.shape[1]

    if use_bf16:
        # MXU-native operands on v6e/v7x; halves the activation DMA bytes.
        state = state.astype(jnp.bfloat16)
        w1 = w1.astype(jnp.bfloat16)
        w2 = w2.astype(jnp.bfloat16)
        w3 = w3.astype(jnp.bfloat16)
        # biases stay f32: bias add / ReLU / softmax run in f32.

    # Batch tile: multiple of 8 (sublane) so (TB, feat) blocks satisfy the tiling rule.
    tb = min(block_b, _round_up(B, 8))
    padded_b = _round_up(B, tb)
    if padded_b != B:
        state = jnp.pad(state, ((0, padded_b - B), (0, 0)))
    grid = (padded_b // tb,)

    # Resident operands: constant (0, 0) block index on every grid step, so the
    # weights/biases are DMA'd into VMEM once and never re-fetched; only the
    # (TB, S) activation tile and the (TB, A) output tile stream through the pipeline.
    def resident(a):
        return pl.BlockSpec(a.shape, lambda i: (0,) * a.ndim)

    flops = 2 * padded_b * (state_dim * fc1_dim + fc1_dim * fc2_dim + fc2_dim * action_dim)
    bytes_accessed = (
        int(state.size) * state.dtype.itemsize
        + padded_b * action_dim * 4
        + sum(int(a.size) * a.dtype.itemsize for a in (w1, b1, w2, b2, w3, b3))
    )
    cost = pl.CostEstimate(
        flops=flops,
        transcendentals=padded_b * action_dim,  # the softmax exp
        bytes_accessed=bytes_accessed,
    )

    out = pl.pallas_call(
        policy_kernel,
        out_shape=jax.ShapeDtypeStruct((padded_b, action_dim), jnp.float32),
        grid=grid,
        in_specs=[
            pl.BlockSpec((tb, state_dim), lambda i: (i, 0)),
            resident(w1), resident(b1),
            resident(w2), resident(b2),
            resident(w3), resident(b3),
        ],
        out_specs=pl.BlockSpec((tb, action_dim), lambda i: (i, 0)),
        # Batch tiles are independent -> megacore sharding on v7x; no-op on v5e/v6e.
        compiler_params=pltpu.CompilerParams(dimension_semantics=("parallel",)),
        cost_estimate=cost,
    )(state, w1, b1, w2, b2, w3, b3)
    return out[:B]


def reference_forward(state, params):
    w1, b1, w2, b2, w3, b3 = params
    h1 = jnp.maximum(state @ w1 + b1, 0.0)
    h2 = jnp.maximum(h1 @ w2 + b2, 0.0)
    logits = h2 @ w3 + b3
    return jax.nn.softmax(logits, axis=-1)


def policy_network_apply(state, params, *, min_pallas_batch=512):
    """Dispatcher: tiny batches go to plain XLA (launch overhead dominates a few
    hundred FLOPs); large batches go through the tiled Pallas kernel."""
    if state.shape[0] < min_pallas_batch:
        return reference_forward(state, params)
    return policy_network_forward(state, params)


def init_params(key, state_dim, action_dim, fc1_dim=32, fc2_dim=32):
    """Deterministic init mimicking nn.Linear's uniform(-1/sqrt(fan_in), 1/sqrt(fan_in))."""
    keys = jax.random.split(key, 6)

    def linear(kw, kb, fan_in, fan_out):
        bound = 1.0 / jnp.sqrt(fan_in)
        w = jax.random.uniform(kw, (fan_in, fan_out), jnp.float32, -bound, bound)
        b = jax.random.uniform(kb, (1, fan_out), jnp.float32, -bound, bound)
        return w, b

    w1, b1 = linear(keys[0], keys[1], state_dim, fc1_dim)
    w2, b2 = linear(keys[2], keys[3], fc1_dim, fc2_dim)
    w3, b3 = linear(keys[4], keys[5], fc2_dim, action_dim)
    return (w1, b1, w2, b2, w3, b3)


if __name__ == "__main__":
    key = jax.random.PRNGKey(0)
    k_params, k_small, k_big = jax.random.split(key, 3)

    state_dim, action_dim = 16, 4
    params = init_params(k_params, state_dim, action_dim, fc1_dim=32, fc2_dim=32)

    # 1) Small-shape smoke test (single grid step, one 8-row tile).
    small_state = jax.random.normal(k_small, (8, state_dim), dtype=jnp.float32)
    probs_small = jax.block_until_ready(policy_network_forward(small_state, params))
    ref_small = reference_forward(small_state, params)
    assert probs_small.shape == (8, action_dim)
    assert jnp.allclose(probs_small, ref_small, atol=1e-5, rtol=1e-5)
    assert jnp.allclose(jnp.sum(probs_small, axis=-1), 1.0, atol=1e-5)

    # Dispatcher path for tiny batches (plain XLA).
    _ = jax.block_until_ready(policy_network_apply(small_state, params))

    # 2) Multi-tile pipelined path: grid of 2 steps at block_b=128, f32 operands.
    big_state = jax.random.normal(k_big, (256, state_dim), dtype=jnp.float32)
    probs_big = jax.block_until_ready(
        policy_network_forward(big_state, params, block_b=128))
    ref_big = reference_forward(big_state, params)
    assert probs_big.shape == (256, action_dim)
    assert jnp.allclose(probs_big, ref_big, atol=1e-5, rtol=1e-5)
    assert jnp.allclose(jnp.sum(probs_big, axis=-1), 1.0, atol=1e-5)

    # 3) bf16 MXU-operand path (v6e/v7x fast path); elementwise math stays f32.
    probs_bf16 = jax.block_until_ready(
        policy_network_forward(big_state, params, block_b=128, use_bf16=True))
    assert jnp.allclose(probs_bf16, ref_big, atol=2e-2, rtol=2e-2)
    assert jnp.allclose(jnp.sum(probs_bf16, axis=-1), 1.0, atol=1e-2)

    print("KERNEL_OK")
</pallas_src>

<mosaic_0001>
module attributes {stable_mosaic.version = 11 : i64} {
  func.func @policy_kernel(%arg0: i32, %arg1: memref<8x16xf32, #tpu.memory_space<vmem>>, %arg2: memref<16x32xf32, #tpu.memory_space<vmem>>, %arg3: memref<1x32xf32, #tpu.memory_space<vmem>>, %arg4: memref<32x32xf32, #tpu.memory_space<vmem>>, %arg5: memref<1x32xf32, #tpu.memory_space<vmem>>, %arg6: memref<32x4xf32, #tpu.memory_space<vmem>>, %arg7: memref<1x4xf32, #tpu.memory_space<vmem>>, %arg8: memref<8x4xf32, #tpu.memory_space<vmem>>) attributes {dimension_semantics = [#tpu.dimension_semantics<parallel>], iteration_bounds = array<i64: 1>, scalar_prefetch = 0 : i64, scratch_operands = 0 : i64, tpu.core_type = #tpu.core_type<tc>, window_params = [{transform_indices = @transform_0, window_bounds = array<i64: 8, 16>}, {pipeline_mode = #tpu.pipeline_mode<synchronous>, transform_indices = @transform_1, window_bounds = array<i64: 16, 32>}, {pipeline_mode = #tpu.pipeline_mode<synchronous>, transform_indices = @transform_2, window_bounds = array<i64: 1, 32>}, {pipeline_mode = #tpu.pipeline_mode<synchronous>, transform_indices = @transform_3, window_bounds = array<i64: 32, 32>}, {pipeline_mode = #tpu.pipeline_mode<synchronous>, transform_indices = @transform_4, window_bounds = array<i64: 1, 32>}, {pipeline_mode = #tpu.pipeline_mode<synchronous>, transform_indices = @transform_5, window_bounds = array<i64: 32, 4>}, {pipeline_mode = #tpu.pipeline_mode<synchronous>, transform_indices = @transform_6, window_bounds = array<i64: 1, 4>}, {transform_indices = @transform_7, window_bounds = array<i64: 8, 4>}]} {
    %c0 = arith.constant 0 : index
    %c0_0 = arith.constant 0 : index
    %0 = vector.load %arg1[%c0, %c0_0] : memref<8x16xf32, #tpu.memory_space<vmem>>, vector<8x16xf32>
    %c0_1 = arith.constant 0 : index
    %c0_2 = arith.constant 0 : index
    %1 = vector.load %arg2[%c0_1, %c0_2] : memref<16x32xf32, #tpu.memory_space<vmem>>, vector<16x32xf32>
    %cst = arith.constant dense<0.000000e+00> : vector<8x32xf32>
    %2 = tpu.matmul %0, %1, %cst {dimension_numbers = #tpu.dot_dimension_numbers<[1], [0], [0], [1], [0, 0, 1, 1], [], []>} : vector<8x16xf32>, vector<16x32xf32>, vector<8x32xf32> -> vector<8x32xf32>
    %c0_3 = arith.constant 0 : index
    %c0_4 = arith.constant 0 : index
    %3 = vector.load %arg3[%c0_3, %c0_4] : memref<1x32xf32, #tpu.memory_space<vmem>>, vector<1x32xf32>
    %4 = vector.broadcast %3 : vector<1x32xf32> to vector<8x32xf32>
    %5 = arith.addf %2, %4 : vector<8x32xf32>
    %cst_5 = arith.constant 0.000000e+00 : f32
    %6 = vector.broadcast %cst_5 : f32 to vector<8x32xf32>
    %7 = arith.maximumf %5, %6 : vector<8x32xf32>
    %c0_6 = arith.constant 0 : index
    %c0_7 = arith.constant 0 : index
    %8 = vector.load %arg4[%c0_6, %c0_7] : memref<32x32xf32, #tpu.memory_space<vmem>>, vector<32x32xf32>
    %cst_8 = arith.constant dense<0.000000e+00> : vector<8x32xf32>
    %9 = tpu.matmul %7, %8, %cst_8 {dimension_numbers = #tpu.dot_dimension_numbers<[1], [0], [0], [1], [0, 0, 1, 1], [], []>} : vector<8x32xf32>, vector<32x32xf32>, vector<8x32xf32> -> vector<8x32xf32>
    %c0_9 = arith.constant 0 : index
    %c0_10 = arith.constant 0 : index
    %10 = vector.load %arg5[%c0_9, %c0_10] : memref<1x32xf32, #tpu.memory_space<vmem>>, vector<1x32xf32>
    %11 = vector.broadcast %10 : vector<1x32xf32> to vector<8x32xf32>
    %12 = arith.addf %9, %11 : vector<8x32xf32>
    %cst_11 = arith.constant 0.000000e+00 : f32
    %13 = vector.broadcast %cst_11 : f32 to vector<8x32xf32>
    %14 = arith.maximumf %12, %13 : vector<8x32xf32>
    %c0_12 = arith.constant 0 : index
    %c0_13 = arith.constant 0 : index
    %15 = vector.load %arg6[%c0_12, %c0_13] : memref<32x4xf32, #tpu.memory_space<vmem>>, vector<32x4xf32>
    %cst_14 = arith.constant dense<0.000000e+00> : vector<8x4xf32>
    %16 = tpu.matmul %14, %15, %cst_14 {dimension_numbers = #tpu.dot_dimension_numbers<[1], [0], [0], [1], [0, 0, 1, 1], [], []>} : vector<8x32xf32>, vector<32x4xf32>, vector<8x4xf32> -> vector<8x4xf32>
    %c0_15 = arith.constant 0 : index
    %c0_16 = arith.constant 0 : index
    %17 = vector.load %arg7[%c0_15, %c0_16] : memref<1x4xf32, #tpu.memory_space<vmem>>, vector<1x4xf32>
    %18 = vector.broadcast %17 : vector<1x4xf32> to vector<8x4xf32>
    %19 = arith.addf %16, %18 : vector<8x4xf32>
    %cst_17 = arith.constant dense<0xFF800000> : vector<8xf32>
    %20 = vector.multi_reduction <maximumf>, %19, %cst_17 [1] : vector<8x4xf32> to vector<8xf32>
    %21 = vector.shape_cast %20 : vector<8xf32> to vector<8x1xf32>
    %22 = vector.broadcast %21 : vector<8x1xf32> to vector<8x4xf32>
    %23 = arith.subf %19, %22 : vector<8x4xf32>
    %24 = math.exp %23 : vector<8x4xf32>
    %cst_18 = arith.constant dense<0.000000e+00> : vector<8xf32>
    %25 = vector.multi_reduction <add>, %24, %cst_18 [1] : vector<8x4xf32> to vector<8xf32>
    %26 = vector.shape_cast %25 : vector<8xf32> to vector<8x1xf32>
    %27 = tpu.reciprocal %26 : vector<8x1xf32> -> vector<8x1xf32>
    %28 = vector.broadcast %27 : vector<8x1xf32> to vector<8x4xf32>
    %29 = arith.mulf %24, %28 : vector<8x4xf32>
    %c0_19 = arith.constant 0 : index
    %c0_20 = arith.constant 0 : index
    %30 = vector.load %arg8[%c0_19, %c0_20] : memref<8x4xf32, #tpu.memory_space<vmem>>, vector<8x4xf32>
    tpu.vector_store %arg8[%c0_19, %c0_20], %29 {strides = array<i32>} : memref<8x4xf32, #tpu.memory_space<vmem>>, vector<8x4xf32>,
    return
  }
  func.func @transform_0(%arg0: i32) -> (i32, i32) {
    %c0_i32 = arith.constant 0 : i32
    %c0_i32_0 = arith.constant 0 : i32
    return %arg0, %c0_i32 : i32, i32
  }
  func.func @transform_1(%arg0: i32) -> (i32, i32) {
    %c0_i32 = arith.constant 0 : i32
    %c0_i32_0 = arith.constant 0 : i32
    %c0_i32_1 = arith.constant 0 : i32
    return %c0_i32, %c0_i32_0 : i32, i32
  }
  func.func @transform_2(%arg0: i32) -> (i32, i32) {
    %c0_i32 = arith.constant 0 : i32
    %c0_i32_0 = arith.constant 0 : i32
    %c0_i32_1 = arith.constant 0 : i32
    return %c0_i32, %c0_i32_0 : i32, i32
  }
  func.func @transform_3(%arg0: i32) -> (i32, i32) {
    %c0_i32 = arith.constant 0 : i32
    %c0_i32_0 = arith.constant 0 : i32
    %c0_i32_1 = arith.constant 0 : i32
    return %c0_i32, %c0_i32_0 : i32, i32
  }
  func.func @transform_4(%arg0: i32) -> (i32, i32) {
    %c0_i32 = arith.constant 0 : i32
    %c0_i32_0 = arith.constant 0 : i32
    %c0_i32_1 = arith.constant 0 : i32
    return %c0_i32, %c0_i32_0 : i32, i32
  }
  func.func @transform_5(%arg0: i32) -> (i32, i32) {
    %c0_i32 = arith.constant 0 : i32
    %c0_i32_0 = arith.constant 0 : i32
    %c0_i32_1 = arith.constant 0 : i32
    return %c0_i32, %c0_i32_0 : i32, i32
  }
  func.func @transform_6(%arg0: i32) -> (i32, i32) {
    %c0_i32 = arith.constant 0 : i32
    %c0_i32_0 = arith.constant 0 : i32
    %c0_i32_1 = arith.constant 0 : i32
    return %c0_i32, %c0_i32_0 : i32, i32
  }
  func.func @transform_7(%arg0: i32) -> (i32, i32) {
    %c0_i32 = arith.constant 0 : i32
    %c0_i32_0 = arith.constant 0 : i32
    return %arg0, %c0_i32 : i32, i32
  }
}

</mosaic_0001>

<bundles_post_ra>
// kernel: tpu_custom_call.1
= control target key start
LH: loop header
LB: loop body
LE: loop exit
PB: predicated region body
PF: predicated region fallthrough
CT: control target
= control target key end

     0   :  { %12 = vsyncpa [#allocation3], 0  ;;  %s339_s0 = inlined_call_operand.hbm [shape: f32[8,16], index: 0, kind: input, shape index: {}]   ;;  %s340_s1 = inlined_call_operand.hbm [shape: f32[16,32], index: 1, kind: input, shape index: {}]   ;;  %s341_s2 = inlined_call_operand.vmem [shape: f32[1,32], index: 2, kind: input, shape index: {}]   ;;  %s342_s3 = inlined_call_operand.vmem [shape: f32[32,32], index: 3, kind: input, shape index: {}]   ;;  %s343_s4 = inlined_call_operand.vmem [shape: f32[1,32], index: 4, kind: input, shape index: {}]   ;;  %s344_s5 = inlined_call_operand.vmem [shape: f32[32,4], index: 5, kind: input, shape index: {}]   ;;  %s345_s6 = inlined_call_operand.vmem [shape: f32[1,4], index: 6, kind: input, shape index: {}]   ;;  %s346_s7 = inlined_call_operand.vmem [shape: f32[8,4], index: 7, kind: output, shape index: {}]  }
   0x1   :  { %s19_s26 = sshll.u32 %s339_s0, 4  ;;  %s20_s26 = int_to_ptr.hbm [resolvable:$true] %s19_s26 }
   0x2   :  { %13 = vsyncpa [#allocation5], 0  ;;  %s250_s27 = smov [#allocation2]   ;;  %s29_s8 = sshll.u32 %s340_s1, 4  ;;  %s30_s8 = int_to_ptr.hbm [resolvable:$true] %s29_s8 }
   0x3   :  { %s21_s28 = sshll.u32 %s250_s27, 4  ;;  %s251_s9 = smov [#allocation4]   ;;  %s22_s28 = int_to_ptr.vmem [resolvable:$true] %s21_s28 }
   0x4   :  { %24 = dma.hbm_to_vmem [thread:$0]  %s20_s26, 128, %s22_s28, [#allocation3]  }
   0x5   :  { %s31_s10 = sshll.u32 %s251_s9, 4  ;;  %s252_s11 = smov 128   ;;  %s32_s10 = int_to_ptr.vmem [resolvable:$true] %s31_s10 }
   0x6   :  { %s253_s12 = smov 8  }
   0x7   :  { %37 = dma.hbm_to_vmem [thread:$0]  %s30_s8, 256, %s32_s10, [#allocation5], %s252_s11, %s252_s11, %s253_s12  }
   0x8   :  { %246 = dma.done.wait [#allocation3], 128  }
   0x9   :  { %247 = vsyncadd [#allocation3], 4294967168 }
   0xa   :  { %248 = dma.done.wait [#allocation5], 256  }
   0xb   :  { %249 = vsyncadd [#allocation5], 4294967040  ;;  %v58_v0 = vld [vmem:[#allocation4 + $0x8] sm:$0xff]  ;;  %v57_v1 = vld [vmem:[#allocation4] sm:$0xff]  ;;  %vm63_vm0 = vcmask 130048   ;;  %vm96_vm1 = vcmask 261120  }
   0xc   :  { %81 = vmatpush.msra.mxu0 %v58_v0  ;;  %v56_v2 = vld [vmem:[#allocation2] sm:$0xff]  ;;  %v91_v3 = vld [vmem:[%s342_s3 + $0x18] sm:$0xff]  ;;  %v90_v4 = vld [vmem:[%s342_s3 + $0x10] sm:$0xff]  ;;  %vm152_vm2 = vcmask 31744  }
   0xd   :  { %112 = vmatpush.msra.mxu1 %v91_v3  ;;  %v89_v5 = vld [vmem:[%s342_s3 + $0x8] sm:$0xff]  ;;  %v88_v6 = vld [vmem:[%s342_s3] sm:$0xff]  ;;  %v124_v7 = vld [vmem:[%s344_s5 + $0x18] sm:$0xff] }
   0xe   :  { %82 = vmatpush.msra.mxu0 %v57_v1  ;;  %144 = vmatpush.msra.mxu2 %v124_v7  ;;  %v191_v8 = vld [vmem:[%s341_s2] ss:$0 sm:$0xff]  ;;  %v123_v12 = vld [vmem:[%s344_s5 + $0x10] sm:$0xff]  ;;  %v122_v13 = vld [vmem:[%s344_s5 + $0x8] sm:$0xff] }
   0xf   :  { %184 = vmatmul.msk.f32.vlgmr.msra.gmra.mxu0 %vm63_vm0, %v56_v2  ;;  %113 = vmatpush.msra.mxu1 %v90_v4  ;;  %v121_v14 = vld [vmem:[%s344_s5] sm:$0xff] }
  0x10   :  { %145 = vmatpush.msra.mxu2 %v123_v12  ;;  %v192_v15 = vld [vmem:[%s343_s4] ss:$0 sm:$0xff] }
  0x11   :  { %114 = vmatpush.msra.mxu1 %v89_v5  ;;  %v193_v19 = vld [vmem:[%s345_s6] ss:$0 sm:$0xff] }
  0x12   :  { %146 = vmatpush.msra.mxu2 %v122_v13 }
  0x13   :  { %115 = vmatpush.msra.mxu1 %v88_v6 }
  0x14   :  { %147 = vmatpush.msra.mxu2 %v121_v14 }
  0x8c   :  { %v84_v9 = vpop.f32.mrf.mxu0 }
  0x8d   :  { %v85_v10 = vadd.f32 %v191_v8, %v84_v9 }
  0x8f   :  { %v87_v11 = vmax.f32 %v85_v10, 0.0 }
  0x91   :  { %185 = vmatmul.msk.f32.vlgmr.msra.gmra.mxu1 %vm96_vm1, %v87_v11 }
 0x10e   :  { %v117_v16 = vpop.f32.mrf.mxu1 }
 0x10f   :  { %v118_v17 = vadd.f32 %v192_v15, %v117_v16 }
 0x111   :  { %v120_v18 = vmax.f32 %v118_v17, 0.0 }
 0x113   :  { %186 = vmatmul.msk.f32.vlgmr.msra.gmra.mxu2 %vm96_vm1, %v120_v18 }
 0x196   :  { %v149_v20 = vpop.f32.mrf.mxu2 }
 0x197   :  { %v150_v21 = vadd.f32 %v193_v19, %v149_v20 }
 0x199   :  { %v153_v22 = vsel %vm152_vm2, %v150_v21, -inf }
 0x19a   :  { %154 = vmax.xlane.f32.xlu0 %v153_v22 }
 0x20d   :  { %v155_v23 = vpop.xlane.xlu0 %154 }
 0x20e   :  { %v156_v24 = vsub.f32 %v150_v21, %v155_v23 }
 0x210   :  { %v157_v25 = vmul.f32 1.442695, %v156_v24 }
 0x212   :  { %194 = vpow2.f32 %v157_v25 }
 0x218   :  { %v195_v26 = vpop.eup %194 }
 0x219   :  { %v159_v27 = vsel %vm152_vm2, %v195_v26, 0.0 }
 0x21a   :  { %160 = vadd.xlane.f32.xlu0 %v159_v27 }
 0x28d   :  { %v161_v28 = vpop.xlane.xlu0 %160 }
 0x28e   :  { %196 = vrcp.f32 %v161_v28  ;;  %v173_v32 = vand.u32 2147483648, %v161_v28  ;;  %v171_v34 = vand.u32 2147483647, %v161_v28  ;;  %vm167_vm4 = vweird.f32 %v161_v28 }
 0x290   :  { %v174_v36 = vor.u32 1.1754944e-38, %v173_v32  ;;  %vm172_vm6 = vcmp.eq.f32.partialorder %v171_v34, 8.507059e+37 }
 0x294   :  { %v197_v29 = vpop.eup %196 }
 0x295   :  { %v163_v30 = vmul.f32 %v197_v29, %v161_v28  ;;  %vm168_vm3 = vweird.f32 %v197_v29 }
 0x296   :  { %vm169_vm5 = vmor %vm167_vm4, %vm168_vm3 }
 0x297   :  { %v164_v31 = vsub.f32 1.0, %v163_v30 }
 0x299   :  { %v165_v33 = vmul.f32 %v197_v29, %v164_v31 }
 0x29b   :  { %v166_v35 = vadd.f32 %v197_v29, %v165_v33 }
 0x29d   :  { %v170_v37 = vsel %vm169_vm5, %v197_v29, %v166_v35 }
 0x29e   :  { %v175_v38 = vsel %vm172_vm6, %v174_v36, %v170_v37 }
 0x29f   :  { %v176_v39 = vmul.f32 %v195_v26, %v175_v38 }
 0x2a1   :  { %177 = vst.msk [vmem:[%s346_s7] sm:$0xff] %vm152_vm2, %v176_v39 }
 0x2a2   :  { %182 = vsyncpa [#allocation3], 1 }
 0x2a3   :  { %183 = vsyncpa [#allocation5], 1 }

</bundles_post_ra>
